<compile_context>
chip_gen: v5e
topology: v5e:2x2
jax: 0.10.0
libtpu: 0.0.40
codegen_flags: <defaults>
</compile_context>

<pallas_src>
import jax
import jax.numpy as jnp
from jax.experimental import pallas as pl
from jax.experimental.pallas import tpu as pltpu


def _layernorm_kernel(musig_ref, x_ref, o_ref):
    # musig_ref: SMEM (2,) scalars -> [mu, sig] (module's constant shift/scale).
    # x_ref:     VMEM (tile_rows, hidden)
    # o_ref:     VMEM (tile_rows, hidden)
    x = x_ref[...].astype(jnp.float32)
    hidden = x.shape[-1]
    inv_h = jnp.float32(1.0 / hidden)

    # Single sum pass for the mean (one XLU reduction), then diff^2 reduction.
    mu = jnp.sum(x, axis=-1, keepdims=True) * inv_h
    diff = x - mu
    var = jnp.sum(diff * diff, axis=-1, keepdims=True) * inv_h
    # Matches PyTorch semantics: eps added to std (sqrt(var) + 1e-4), not var.
    sigma = jnp.sqrt(var) + jnp.float32(1e-4)

    shift = musig_ref[0]   # self.mu
    scale = musig_ref[1]   # self.sig

    # One reciprocal per row (EUP) instead of `hidden` divides per row;
    # approx=False keeps the 1e-5 tolerance vs the exact reference.
    inv_sigma = pl.reciprocal(sigma)          # (tile_rows, 1)
    row_scale = inv_sigma * scale             # fold affine scale into row factor

    o_ref[...] = (diff * row_scale + shift).astype(o_ref.dtype)


def _round_up(n, m):
    return ((n + m - 1) // m) * m


def _sublane_align(dtype):
    # f32 -> 8 sublanes, bf16/f16 -> 16 (2 rows/sublane), int8/fp8 -> 32.
    itemsize = jnp.dtype(dtype).itemsize
    return {4: 8, 2: 16, 1: 32}.get(itemsize, 8)


def _pick_tile_rows(rows, hidden, dtype):
    align = _sublane_align(dtype)
    itemsize = jnp.dtype(dtype).itemsize
    # ~6 MiB per tile: with input+output each double-buffered that's ~24 MiB of
    # VMEM, comfortably under v7x's 64 MiB physical and v5e/v6e's 128 MiB.
    tile_budget_bytes = 6 * 1024 * 1024
    by_vmem = max(align, tile_budget_bytes // max(1, hidden * itemsize))
    tile = min(_round_up(rows, align), by_vmem)
    if rows > align:
        # Keep at least 2 grid steps so v7x megacore gets both TensorCores busy.
        tile = min(tile, _round_up(pl.cdiv(rows, 2), align))
    tile = max(align, (tile // align) * align)
    return tile


def layernorm_pallas(x, mu, sig, *, tile_rows=None):
    """x: (..., hidden). Normalizes over last axis; returns same shape/dtype."""
    orig_shape = x.shape
    hidden = orig_shape[-1]
    x2d = x.reshape(-1, hidden)
    rows = x2d.shape[0]
    itemsize = jnp.dtype(x.dtype).itemsize

    if tile_rows is None:
        tile_rows = _pick_tile_rows(rows, hidden, x.dtype)

    # Ragged rows: pad to a multiple of tile_rows (padded rows are harmless —
    # zero rows give sigma = 1e-4, finite output — and are sliced off below).
    rows_p = _round_up(rows, tile_rows)
    if rows_p != rows:
        x2d = jnp.pad(x2d, ((0, rows_p - rows), (0, 0)))

    # TODO(synk): for hidden < 128 the last dim underfills the 128-lane vreg
    # (masked vst); a rows-on-lanes transposed layout would recover that BW.

    musig = jnp.asarray([mu, sig], dtype=jnp.float32)

    cost = pl.CostEstimate(
        flops=7 * rows * hidden,
        transcendentals=2 * rows,
        bytes_accessed=2 * rows * hidden * itemsize,
    )

    out = pl.pallas_call(
        _layernorm_kernel,
        out_shape=jax.ShapeDtypeStruct((rows_p, hidden), x.dtype),
        grid=(rows_p // tile_rows,),
        in_specs=[
            pl.BlockSpec(memory_space=pltpu.MemorySpace.SMEM),      # musig scalars
            pl.BlockSpec((tile_rows, hidden), lambda i: (i, 0)),    # x tile
        ],
        out_specs=pl.BlockSpec((tile_rows, hidden), lambda i: (i, 0)),
        compiler_params=pltpu.CompilerParams(
            dimension_semantics=("parallel",),
            vmem_limit_bytes=48 * 1024 * 1024,
        ),
        cost_estimate=cost,
    )(musig, x2d)

    if rows_p != rows:
        out = out[:rows]
    return out.reshape(orig_shape)


def layernorm_ref(x, mu, sig):
    """Pure-JAX reference mirroring the PyTorch forward exactly."""
    m = jnp.mean(x, axis=-1, keepdims=True)
    s = jnp.sqrt(jnp.mean((x - m) ** 2, axis=-1, keepdims=True)) + 0.0001
    return (x - m) / s * sig + mu


if __name__ == "__main__":
    key = jax.random.PRNGKey(0)

    # Deterministic "parameters": musig = (mu, sig) from the module __init__.
    mu_param = 0.25
    sig_param = 1.5

    # Small shapes consistent with the forward: (batch=2, seq=8, hidden=32).
    batch, seq, hidden = 2, 8, 32
    x = jax.random.normal(key, (batch, seq, hidden), dtype=jnp.float32)

    y = layernorm_pallas(x, mu_param, sig_param)
    y = jax.block_until_ready(y)
    y_ref = layernorm_ref(x, mu_param, sig_param)
    assert jnp.allclose(y, y_ref, atol=1e-5, rtol=1e-5), "mismatch vs reference"

    # Second check: ragged row count (exercises the padding path).
    x2 = jax.random.normal(jax.random.PRNGKey(1), (3, 5, hidden), dtype=jnp.float32)
    y2 = jax.block_until_ready(layernorm_pallas(x2, mu_param, sig_param))
    y2_ref = layernorm_ref(x2, mu_param, sig_param)
    assert jnp.allclose(y2, y2_ref, atol=1e-5, rtol=1e-5), "mismatch (ragged rows)"

    print("KERNEL_OK")
</pallas_src>

<mosaic_0001>
module attributes {stable_mosaic.version = 11 : i64} {
  func.func @_layernorm_kernel(%arg0: i32, %arg1: memref<2xf32, #tpu.memory_space<smem>>, %arg2: memref<8x32xf32, #tpu.memory_space<vmem>>, %arg3: memref<8x32xf32, #tpu.memory_space<vmem>>) attributes {dimension_semantics = [#tpu.dimension_semantics<parallel>], iteration_bounds = array<i64: 2>, scalar_prefetch = 0 : i64, scratch_operands = 0 : i64, tpu.core_type = #tpu.core_type<tc>, window_params = [{transform_indices = @transform_0, window_bounds = array<i64: 2>}, {transform_indices = @transform_1, window_bounds = array<i64: 8, 32>}, {transform_indices = @transform_2, window_bounds = array<i64: 8, 32>}]} {
    %c0 = arith.constant 0 : index
    %c0_0 = arith.constant 0 : index
    %0 = vector.load %arg2[%c0, %c0_0] : memref<8x32xf32, #tpu.memory_space<vmem>>, vector<8x32xf32>
    %cst = arith.constant dense<0.000000e+00> : vector<8xf32>
    %1 = vector.multi_reduction <add>, %0, %cst [1] : vector<8x32xf32> to vector<8xf32>
    %2 = vector.shape_cast %1 : vector<8xf32> to vector<8x1xf32>
    %cst_1 = arith.constant 3.125000e-02 : f32
    %3 = vector.broadcast %cst_1 : f32 to vector<8x1xf32>
    %4 = arith.mulf %2, %3 : vector<8x1xf32>
    %5 = vector.broadcast %4 : vector<8x1xf32> to vector<8x32xf32>
    %6 = arith.subf %0, %5 : vector<8x32xf32>
    %7 = arith.mulf %6, %6 : vector<8x32xf32>
    %cst_2 = arith.constant dense<0.000000e+00> : vector<8xf32>
    %8 = vector.multi_reduction <add>, %7, %cst_2 [1] : vector<8x32xf32> to vector<8xf32>
    %9 = vector.shape_cast %8 : vector<8xf32> to vector<8x1xf32>
    %cst_3 = arith.constant 3.125000e-02 : f32
    %10 = vector.broadcast %cst_3 : f32 to vector<8x1xf32>
    %11 = arith.mulf %9, %10 : vector<8x1xf32>
    %12 = math.sqrt %11 : vector<8x1xf32>
    %cst_4 = arith.constant 9.99999974E-5 : f32
    %13 = vector.broadcast %cst_4 : f32 to vector<8x1xf32>
    %14 = arith.addf %12, %13 : vector<8x1xf32>
    %c0_5 = arith.constant 0 : index
    %15 = memref.load %arg1[%c0_5] : memref<2xf32, #tpu.memory_space<smem>>
    %c1 = arith.constant 1 : index
    %16 = memref.load %arg1[%c1] : memref<2xf32, #tpu.memory_space<smem>>
    %17 = tpu.reciprocal %14 : vector<8x1xf32> -> vector<8x1xf32>
    %18 = vector.broadcast %16 : f32 to vector<8x1xf32>
    %19 = arith.mulf %17, %18 : vector<8x1xf32>
    %20 = vector.broadcast %19 : vector<8x1xf32> to vector<8x32xf32>
    %21 = arith.mulf %6, %20 : vector<8x32xf32>
    %22 = vector.broadcast %15 : f32 to vector<8x32xf32>
    %23 = arith.addf %21, %22 : vector<8x32xf32>
    %c0_6 = arith.constant 0 : index
    %c0_7 = arith.constant 0 : index
    %24 = vector.load %arg3[%c0_6, %c0_7] : memref<8x32xf32, #tpu.memory_space<vmem>>, vector<8x32xf32>
    tpu.vector_store %arg3[%c0_6, %c0_7], %23 {strides = array<i32>} : memref<8x32xf32, #tpu.memory_space<vmem>>, vector<8x32xf32>,
    return
  }
  func.func @transform_0(%arg0: i32) -> i32 {
    %c0_i32 = arith.constant 0 : i32
    %c0_i32_0 = arith.constant 0 : i32
    return %c0_i32 : i32
  }
  func.func @transform_1(%arg0: i32) -> (i32, i32) {
    %c0_i32 = arith.constant 0 : i32
    %c0_i32_0 = arith.constant 0 : i32
    return %arg0, %c0_i32 : i32, i32
  }
  func.func @transform_2(%arg0: i32) -> (i32, i32) {
    %c0_i32 = arith.constant 0 : i32
    %c0_i32_0 = arith.constant 0 : i32
    return %arg0, %c0_i32 : i32, i32
  }
}

</mosaic_0001>

<bundles_post_ra>
// kernel: tpu_custom_call.1
= control target key start
LH: loop header
LB: loop body
LE: loop exit
PB: predicated region body
PF: predicated region fallthrough
CT: control target
= control target key end

     0   :  { %7 = vsyncpa [#allocation5], 0  ;;  %s674_s0 = inlined_call_operand.hbm [shape: f32[2], index: 0, kind: input, shape index: {}]   ;;  %s675_s1 = inlined_call_operand.hbm [shape: f32[16,32], index: 1, kind: input, shape index: {}]   ;;  %s676_s2 = inlined_call_operand.hbm [shape: f32[16,32], index: 2, kind: output, shape index: {}]  }
   0x1   :  { %8 = vsyncpa [#allocation3], 0 }
   0x2   :  { %10 = vsyncpa [#allocation3 + $0x1], 0 }
   0x3   :  { %11 = vsyncpa [#allocation4], 0 }
   0x4   :  { %13 = vsyncpa [#allocation4 + $0x1], 0  ;;  %s529_s9 = smov 0   ;;  %s531_s10 = smov 0  }
   0x5   :  { %s533_s11 = smov 0   ;;  %s535_s12 = smov 0  }
   0x6 LB: > { %s550_s13 = sadd.s32 4294967295, %s511_s12   ;;  %s320_s14 = sadd.s32 4294967294, %s511_s12   ;;  %s511_s12 = sphi %s535_s12, %s686_s12   ;;  %s507_s11 = sphi %s533_s11, %s685_s11   ;;  %s503_s10 = sphi %s531_s10, %s684_s10   ;;  %s499_s9 = sphi %s529_s9, %s683_s9  }
   0x7   : > { %p60_p0 = scmp.ne.s32.totalorder %s503_s10, %s499_s9  ;;  %p61_p1 = scmp.eq.s32.totalorder %s550_s13, 0 }
   0x8   : > { %p84_p2 = scmp.eq.s32.totalorder %s550_s13, 1  ;;  %p90_p3 = scmp.eq.s32.totalorder %s320_s14, 1 }
   0x9   : > { %p559_p4 = por %p61_p1, %p60_p0  ;;  %p321_p5 = scmp.ge.s32.totalorder %s511_s12, 1 }
   0xa   : > { %p564_p6 = por %p90_p3, %p60_p0  ;;  %p97_p7 = scmp.lt.s32.totalorder %s511_s12, 3 }
   0xb   : > { %s109_s19 = sshll.u32 %s674_s0, 4  ;;  %s580_s21 = sadd.s32 1, %s511_s12   ;;  %s110_s19 = int_to_ptr.hbm [resolvable:$true] %s109_s19 }
   0xc   : > { %p572_p8 = pnand %p321_p5, %p97_p7  ;;  %s44_s22 = ssub.s32 %s511_s12, %s580_s21 }
   0xd   : > { %p45_p12 = scmp.eq.s32.totalorder %s44_s22, 0  ;;  %s47_s23 = sadd.s32 1, %s507_s11 }
   0xe   : > { %p343_p10 = pneg %p572_p8  ;;  %p54_p13 = scmp.ne.s32.totalorder %s507_s11, %s503_s10 }
   0xf   : > { %s513_s24 = smov [#allocation2]   ;;  %p55_p0 = scmp.eq.s32.totalorder %s511_s12, 0 }
  0x10   : > { %p344_p11 = pnand %p343_p10, %p61_p1  ;;  %p595_p3 = por %p84_p2, %p54_p13 }
  0x11   : > { %s590_s25 = scalar_select %p45_p12, %s507_s11, %s47_s23  }
  0x12   : > { %346 = dma.hbm_to_smem (!%p344_p11), %s110_s19, 16, %s513_s24, [#allocation5]  }
  0x13   : > { %s120_s27 = sand.u32 1, %s507_s11   ;;  %p56_p5 = por %p55_p0, %p54_p13 }
  0x14   : > { %p356_p7 = scmp.lt.s32.totalorder %s511_s12, 2  ;;  %s324_s28 = sshll.u32 %s120_s27, 3 }
  0x15   : > { %s325_s29 = sshll.u32 %s511_s12, 3  ;;  %s124_s6 = scalar_lea.vmem [#allocation6], %s324_s28 }
  0x16   : > { %s128_s4 = scalar_lea.hbm %s675_s1, %s325_s29  ;;  %s132_s7 = sshll.u32 %s124_s6, 4  ;;  %s133_s7 = int_to_ptr.vmem [resolvable:$true] %s132_s7 }
  0x17   : > { %s130_s5 = sshll.u32 %s128_s4, 4  ;;  %p605_p10 = pnand %p356_p7, %p56_p5  ;;  %s131_s5 = int_to_ptr.hbm [resolvable:$true] %s130_s5 }
  0x18   : > { %s121_s14 = scalar_lea.sflag [#allocation3], %s120_s27  ;;  %s411_s17 = sshra.s32 %s131_s5, 4  ;;  %s412_s17 = int_to_ptr.hbm [resolvable:$true] %s411_s17 }
  0x19   : > { %s413_s18 = scalar_lea.hbm %s412_s17, 8  ;;  %p415_p11 = pneg %p605_p10 }
  0x1a   : > { %p414_p2 = scmp.ne.s32.totalorder %s412_s17, %s413_s18  ;;  %s418_s23 = scalar_lea.hbm %s675_s1, 16 }
  0x1b   : > { %p419_p0 = scmp.lt.s32.totalorder %s412_s17, %s675_s1  ;;  %p420_p5 = scmp.lt.s32.totalorder %s418_s23, %s413_s18 }
  0x1c   : > { %p416_p12 = pnand %p415_p11, %p414_p2 }
  0x1d   : > { %p421_p7 = por %p420_p5, %p419_p0 }
  0x1e   : > { %p417_p13 = pneg %p416_p12 }
  0x20   : > { %p422_p9 = pnand %p421_p7, %p417_p13 }
  0x22   : > { %425 = shalt.err (!%p422_p9)
}
  0x23   : > { %350 = dma.hbm_to_vmem [thread:$0]  (!%p605_p10), %s131_s5, 128, %s133_s7, %s121_s14  }
  0x24   : > { %141 = sbr.rel (%p572_p8) target bundleno = 340 (0x154), region = 28 }
  0x29   : > { %486 = dma.done.wait (%p61_p1), [#allocation5], 16  }
  0x2a   : > { %488 = vsyncadd (%p61_p1), [#allocation5], 4294967280  ;;  %s626_s27 = sand.u32 1, %s503_s10  }
  0x2b   : > { %s328_s29 = sshll.u32 %s626_s27, 3  ;;  %s149_s30 = scalar_lea.sflag [#allocation3], %s626_s27 }
  0x2c   : > { %s152_s3 = scalar_lea.vmem [#allocation6], %s328_s29 }
  0x2d   : > { %490 = dma.done.wait (%p559_p4), %s149_s30, 128  }
  0x2e   : > { %492 = vsyncadd (%p559_p4), %s149_s30, 4294967168 }
  0x2f   : > { %158 = sfence }
  0x30   : > { %v175_v0 = vld [vmem:[%s152_s3] sm:$0xff]  ;;  %vm176_vm0 = vcmask 261120   ;;  %s330_s15 = sld [smem:[#allocation2 + $0x1]]  ;;  %s332_s4 = sshll.u32 %s550_s13, 3 }
  0x31   : > { %v177_v1 = vsel %vm176_vm0, %v175_v0, 0.0  ;;  %s200_s20 = sld [smem:[#allocation2]]  ;;  %s233_s7 = scalar_lea.hbm %s676_s2, %s332_s4 }
  0x32   : > { %178 = vadd.xlane.f32.xlu0 %v177_v1  ;;  %s174_s8 = scalar_lea.vmem [#allocation7], %s328_s29  ;;  %s237_s13 = sshll.u32 %s233_s7, 4  ;;  %s238_s13 = int_to_ptr.hbm [resolvable:$true] %s237_s13 }
  0x33   : > { %s235_s14 = sshll.u32 %s174_s8, 4  ;;  %s223_s17 = scalar_lea.sflag [#allocation4], %s626_s27  ;;  %s236_s14 = int_to_ptr.vmem [resolvable:$true] %s235_s14 }
  0x34   : > { %s455_s18 = sshra.s32 %s238_s13, 4  ;;  %s461_s24 = scalar_lea.hbm %s676_s2, 16  ;;  %s456_s18 = int_to_ptr.hbm [resolvable:$true] %s455_s18 }
  0x35   : > { %s457_s19 = scalar_lea.hbm %s456_s18, 8  ;;  %p462_p9 = scmp.lt.s32.totalorder %s456_s18, %s676_s2 }
  0x36   : > { %v216_v28 = vstv %s330_s15  ;;  %p458_p1 = scmp.ne.s32.totalorder %s456_s18, %s457_s19  ;;  %p463_p10 = scmp.lt.s32.totalorder %s461_s24, %s457_s19 }
  0x37   : > { %v219_v32 = vstv %s200_s20 }
  0x38   : > { %p459_p4 = pnand %p458_p1, %p595_p3  ;;  %p464_p2 = por %p463_p10, %p462_p9 }
  0x3a   : > { %p460_p8 = pneg %p459_p4 }
  0x3c   : > { %p465_p11 = pnand %p464_p2, %p460_p8 }
  0xa5   : > { %v179_v2 = vpop.xlane.xlu0 %178 }
  0xa6   : > { %v180_v3 = vmul.f32 0.03125, %v179_v2 }
  0xa8   : > { %v181_v4 = vsub.f32 %v175_v0, %v180_v3 }
  0xaa   : > { %v182_v5 = vmul.f32 %v181_v4, %v181_v4 }
  0xac   : > { %v183_v6 = vsel %vm176_vm0, %v182_v5, 0.0 }
  0xad   : > { %184 = vadd.xlane.f32.xlu0 %v183_v6 }
 0x120   : > { %v185_v7 = vpop.xlane.xlu0 %184 }
 0x121   : > { %v186_v8 = vmul.f32 0.03125, %v185_v7 }
 0x123   : > { %392 = vrsqrt.f32 %v186_v8  ;;  %vm194_vm1 = vcmp.eq.f32.partialorder %v186_v8, inf  ;;  %v197_v16 = vand.u32 2147483648, %v186_v8  ;;  %vm196_vm2 = vcmp.eq.f32.partialorder %v186_v8, 0.0 }
 0x129   : > { %v393_v9 = vpop.eup %392 }
 0x12a   : > { %v188_v10 = vmul.f32 %v393_v9, %v186_v8 }
 0x12c   : > { %v189_v11 = vmul.f32 %v393_v9, %v188_v10 }
 0x12e   : > { %v190_v12 = vmul.f32 0.5, %v189_v11 }
 0x130   : > { %v191_v13 = vsub.f32 1.5, %v190_v12 }
 0x132   : > { %v192_v14 = vmul.f32 %v393_v9, %v191_v13 }
 0x134   : > { %v193_v15 = vmul.f32 %v192_v14, %v186_v8 }
 0x136   : > { %v195_v17 = vsel %vm194_vm1, %v186_v8, %v193_v15 }
 0x137   : > { %v198_v18 = vsel %vm196_vm2, %v197_v16, %v195_v17 }
 0x138   : > { %v199_v19 = vadd.f32 0.0001, %v198_v18 }
 0x13a   : > { %394 = vrcp.f32 %v199_v19  ;;  %v213_v23 = vand.u32 2147483648, %v199_v19  ;;  %v211_v25 = vand.u32 2147483647, %v199_v19  ;;  %vm207_vm4 = vweird.f32 %v199_v19 }
 0x13c   : > { %v214_v27 = vor.u32 1.1754944e-38, %v213_v23  ;;  %vm212_vm6 = vcmp.eq.f32.partialorder %v211_v25, 8.507059e+37 }
 0x140   : > { %v395_v20 = vpop.eup %394 }
 0x141   : > { %v203_v21 = vmul.f32 %v395_v20, %v199_v19  ;;  %vm208_vm3 = vweird.f32 %v395_v20 }
 0x142   : > { %vm209_vm5 = vmor %vm207_vm4, %vm208_vm3 }
 0x143   : > { %v204_v22 = vsub.f32 1.0, %v203_v21 }
 0x145   : > { %v205_v24 = vmul.f32 %v395_v20, %v204_v22 }
 0x147   : > { %v206_v26 = vadd.f32 %v395_v20, %v205_v24 }
 0x149   : > { %v210_v29 = vsel %vm209_vm5, %v395_v20, %v206_v26 }
 0x14a   : > { %v215_v30 = vsel %vm212_vm6, %v214_v27, %v210_v29 }
 0x14b   : > { %v217_v31 = vmul.f32 %v216_v28, %v215_v30 }
 0x14d   : > { %v218_v33 = vmul.f32 %v217_v31, %v181_v4 }
 0x14f   : > { %v220_v34 = vadd.f32 %v219_v32, %v218_v33 }
 0x151   : > { %221 = vst.msk [vmem:[%s174_s8] sm:$0xff] %vm176_vm0, %v220_v34 }
 0x152   : > { %468 = shalt.err (!%p465_p11)
}
 0x153   : > { %341 = dma.vmem_to_hbm [thread:$0]  (%p595_p3), %s236_s14, 128, %s238_s13, %s223_s17  }
 0x154 PF: > { %s249_s27 = sand.u32 1, %s499_s9   ;;  %p682_p12 = scmp.ge.s32.totalorder %s511_s12, 2 }
 0x155   : > { %s250_s30 = scalar_lea.sflag [#allocation4], %s249_s27 }
 0x156   : > { %p352_p13 = pnand %p682_p12, %p564_p6 }
 0x158   : > { %p353_p0 = pneg %p352_p13 }
 0x15a   : > { %494 = dma.done.wait (%p353_p0), %s250_s30, 128  }
 0x15b   : > { %496 = vsyncadd (%p353_p0), %s250_s30, 4294967168  ;;  %p16_p5 = scmp.ge.s32.totalorder %s580_s21, 4   ;;  %s683_s9 = smov %s503_s10 }
 0x15c   : > { %s684_s10 = smov %s507_s11  ;;  %s685_s11 = smov %s590_s25 }
 0x15d   : > { %s686_s12 = smov %s580_s21  ;;  %18 = sbr.rel (!%p16_p5) target bundleno = 6 (0x6), region = 78 }
 0x162   :  { %256 = vsyncpa [#allocation3], 1 }
 0x163   :  { %258 = vsyncpa [#allocation3 + $0x1], 1 }
 0x164   :  { %259 = vsyncpa [#allocation4], 1 }
 0x165   :  { %261 = vsyncpa [#allocation4 + $0x1], 1 }
 0x166   :  { %262 = vsyncpa [#allocation5], 1 }
 0x167   :  { %264 = vsyncpa [#allocation5 + $0x1], 1 }

</bundles_post_ra>
